<compile_context>
chip_gen: v6e
topology: v6e:2x2x1
jax: 0.10.0
libtpu: 0.0.40
codegen_flags: <defaults>
</compile_context>

<pallas_src>
import functools

import jax
import jax.numpy as jnp
from jax.experimental import pallas as pl
from jax.experimental.pallas import tpu as pltpu


def _round_up(x, m):
    return ((x + m - 1) // m) * m


def _g_gaussian_kernel(z_ref, lab_ref, p_ref, out_ref, *, nz, num_classes):
    """z_ref: (nz, T) f32, lab_ref: (1, T) i32, p_ref: packed params, out_ref: (1, T)."""
    tile = z_ref.shape[1]

    w1z = p_ref[:, 0:nz]                                   # (H, nz)
    if num_classes == 2:
        # packed = [w1z | (w1e_emb[:,1]-w1e_emb[:,0]) | b1+w1e_emb[:,0] | W23^T | b23@row0]
        diff = p_ref[:, nz:nz + 1]                         # (H, 1)
        b1 = p_ref[:, nz + 1:nz + 2]                       # (H, 1)
        w23t = p_ref[:, nz + 2:nz + 3]                     # (H, 1)
        b23 = p_ref[0:1, nz + 3:nz + 4]                    # (1, 1)
        lab = lab_ref[...].astype(jnp.float32)             # (1, T)
        emb_term = diff * lab                              # (H, T)  pure VPU lerp
    else:
        # packed = [w1z | w1e_emb (H,C) | b1 | W23^T | b23@row0]
        c = num_classes
        w1e_emb = p_ref[:, nz:nz + c]                      # (H, C)
        b1 = p_ref[:, nz + c:nz + c + 1]
        w23t = p_ref[:, nz + c + 1:nz + c + 2]
        b23 = p_ref[0:1, nz + c + 2:nz + c + 3]
        onehot = (jax.lax.broadcasted_iota(jnp.int32, (c, tile), 0)
                  == lab_ref[...]).astype(jnp.float32)     # (C, T)
        emb_term = jnp.dot(w1e_emb, onehot, preferred_element_type=jnp.float32)

    h = jnp.dot(w1z, z_ref[...], preferred_element_type=jnp.float32) + emb_term + b1
    h = jnp.tanh(h)                                        # (H, T)
    # Fused Linear(10,10)+Linear(10,1): out = W23 @ h + b23  (VPU mul + sublane reduce)
    out_ref[...] = jnp.sum(w23t * h, axis=0, keepdims=True) + b23


def prepare_params(p, *, nz, num_classes):
    """One-time fold of the PyTorch-layout params into a single packed array."""
    w1z = p["w1"][:, :nz]                                  # (H, nz)
    w1e = p["w1"][:, nz:]                                  # (H, nz)
    w1e_emb = w1e @ p["embed"].T                           # (H, C)   embed fused through W1
    w23 = p["w3"] @ p["w2"]                                # (1, H)   Linear2+Linear3 fused
    b23 = p["w3"] @ p["b2"] + p["b3"]                      # (1,)
    hidden = p["w1"].shape[0]
    w23t = w23.T                                           # (H, 1)
    b23_col = jnp.zeros((hidden, 1), jnp.float32).at[0, 0].set(b23[0])
    if num_classes == 2:
        diff = w1e_emb[:, 1:2] - w1e_emb[:, 0:1]
        b1_eff = p["b1"][:, None] + w1e_emb[:, 0:1]
        packed = jnp.concatenate([w1z, diff, b1_eff, w23t, b23_col], axis=1)
    else:
        packed = jnp.concatenate([w1z, w1e_emb, p["b1"][:, None], w23t, b23_col], axis=1)
    return packed.astype(jnp.float32)


@functools.partial(jax.jit, static_argnames=("nz", "num_classes", "tile_n"))
def g_gaussian_forward(z_t, label, packed, *, nz, num_classes, tile_n=32768):
    """z_t: (nz, N) f32 (batch on lanes), label: (N,) int.  Returns (N, 1) f32."""
    n = z_t.shape[1]
    hidden, pw = packed.shape

    # Batch tiling: big tiles (amortize per-step overhead), even split (minimal pad),
    # and >=2 grid steps when free so both v7x TensorCores get work.
    n128 = _round_up(n, 128)
    tile = min(_round_up(tile_n, 128), n128)
    steps = pl.cdiv(n128, tile)
    if steps == 1 and n128 >= 256 and (n128 // 2) % 128 == 0:
        steps = 2
    tile = _round_up(pl.cdiv(n128, steps), 128)
    n_pad = steps * tile

    zf = z_t.astype(jnp.float32)
    lab = label.astype(jnp.int32).reshape(1, n)
    if n_pad != n:  # only pay a pad pass when N is not already lane-aligned
        zf = jnp.pad(zf, ((0, 0), (0, n_pad - n)))
        lab = jnp.pad(lab, ((0, 0), (0, n_pad - n)))       # pad label 0 is a valid class

    batch_map = lambda i: (0, i)
    resident = lambda i: (0, 0)                            # params stay in VMEM

    kernel = functools.partial(_g_gaussian_kernel, nz=nz, num_classes=num_classes)
    out = pl.pallas_call(
        kernel,
        grid=(steps,),
        in_specs=[
            pl.BlockSpec((nz, tile), batch_map),           # z (lane-dense batch)
            pl.BlockSpec((1, tile), batch_map),            # label
            pl.BlockSpec((hidden, pw), resident),          # packed params
        ],
        out_specs=pl.BlockSpec((1, tile), batch_map),
        out_shape=jax.ShapeDtypeStruct((1, n_pad), jnp.float32),
        compiler_params=pltpu.CompilerParams(
            dimension_semantics=("parallel",)),
        cost_estimate=pl.CostEstimate(
            flops=2 * n_pad * hidden * (nz + 2),
            transcendentals=n_pad * hidden,
            bytes_accessed=n_pad * (4 * nz + 4 + 4) + int(packed.size) * 4,
        ),
    )(zf, lab, packed)

    if n_pad != n:
        out = out[:, :n]
    return out.reshape(n, 1)                               # (1,N)->(N,1) reshape is free


def init_params(key, nz=2, num_classes=2, hidden=10):
    """Deterministic params in PyTorch layout (out_features, in_features)."""
    ks = jax.random.split(key, 7)
    w = lambda k, s: 0.02 * jax.random.normal(k, s, dtype=jnp.float32)
    return dict(
        embed=w(ks[0], (num_classes, nz)),                 # nn.Embedding.weight
        w1=w(ks[1], (hidden, 2 * nz)), b1=w(ks[2], (hidden,)),
        w2=w(ks[3], (hidden, hidden)), b2=w(ks[4], (hidden,)),
        w3=w(ks[5], (1, hidden)), b3=w(ks[6], (1,)),
    )


def reference_forward(z, label, p):
    """Pure-JAX mirror of the PyTorch forward (unfused)."""
    e = p["embed"][label]                                  # (N, nz)
    x = jnp.concatenate([z, e], axis=1)                    # (N, 2nz)
    h = jnp.tanh(x @ p["w1"].T + p["b1"])
    h = h @ p["w2"].T + p["b2"]
    return h @ p["w3"].T + p["b3"]                         # (N, 1)


if __name__ == "__main__":
    key = jax.random.PRNGKey(0)
    pkey, zkey, lkey = jax.random.split(key, 3)

    nz, num_classes, hidden, N = 2, 2, 10, 256
    params = init_params(pkey, nz=nz, num_classes=num_classes, hidden=hidden)
    packed = prepare_params(params, nz=nz, num_classes=num_classes)

    # z produced directly in the lane-dense (nz, N) layout the kernel consumes.
    z_t = jax.random.normal(zkey, (nz, N), dtype=jnp.float32)
    label = jax.random.randint(lkey, (N,), 0, num_classes)

    out = g_gaussian_forward(z_t, label, packed, nz=nz, num_classes=num_classes)
    jax.block_until_ready(out)

    ref = reference_forward(z_t.T, label, params)
    assert out.shape == (N, 1), out.shape
    assert jnp.allclose(out, ref, atol=1e-5, rtol=1e-4), (out, ref)

    print("KERNEL_OK")
</pallas_src>

<mosaic_0001>
module attributes {stable_mosaic.version = 11 : i64} {
  func.func @_g_gaussian_kernel(%arg0: i32, %arg1: memref<2x128xf32, #tpu.memory_space<vmem>>, %arg2: memref<1x128xi32, #tpu.memory_space<vmem>>, %arg3: memref<10x6xf32, #tpu.memory_space<vmem>>, %arg4: memref<1x128xf32, #tpu.memory_space<vmem>>) attributes {dimension_semantics = [#tpu.dimension_semantics<parallel>], iteration_bounds = array<i64: 2>, scalar_prefetch = 0 : i64, scratch_operands = 0 : i64, tpu.core_type = #tpu.core_type<tc>, window_params = [{transform_indices = @transform_0, window_bounds = array<i64: 2, 128>}, {transform_indices = @transform_1, window_bounds = array<i64: 1, 128>}, {pipeline_mode = #tpu.pipeline_mode<synchronous>, transform_indices = @transform_2, window_bounds = array<i64: 10, 6>}, {transform_indices = @transform_3, window_bounds = array<i64: 1, 128>}]} {
    %c0 = arith.constant 0 : index
    %c0_0 = arith.constant 0 : index
    %0 = vector.load %arg3[%c0, %c0_0] : memref<10x6xf32, #tpu.memory_space<vmem>>, vector<10x2xf32>
    %c0_1 = arith.constant 0 : index
    %c2 = arith.constant 2 : index
    %1 = vector.load %arg3[%c0_1, %c2] : memref<10x6xf32, #tpu.memory_space<vmem>>, vector<10x1xf32>
    %c0_2 = arith.constant 0 : index
    %c3 = arith.constant 3 : index
    %2 = vector.load %arg3[%c0_2, %c3] : memref<10x6xf32, #tpu.memory_space<vmem>>, vector<10x1xf32>
    %c0_3 = arith.constant 0 : index
    %c4 = arith.constant 4 : index
    %3 = vector.load %arg3[%c0_3, %c4] : memref<10x6xf32, #tpu.memory_space<vmem>>, vector<10x1xf32>
    %c0_4 = arith.constant 0 : index
    %c5 = arith.constant 5 : index
    %4 = vector.load %arg3[%c0_4, %c5] : memref<10x6xf32, #tpu.memory_space<vmem>>, vector<1x1xf32>
    %c0_5 = arith.constant 0 : index
    %c0_6 = arith.constant 0 : index
    %5 = vector.load %arg2[%c0_5, %c0_6] : memref<1x128xi32, #tpu.memory_space<vmem>>, vector<1x128xi32>
    %6 = arith.sitofp %5 : vector<1x128xi32> to vector<1x128xf32>
    %7 = vector.broadcast %1 : vector<10x1xf32> to vector<10x128xf32>
    %8 = vector.broadcast %6 : vector<1x128xf32> to vector<10x128xf32>
    %9 = arith.mulf %7, %8 : vector<10x128xf32>
    %c0_7 = arith.constant 0 : index
    %c0_8 = arith.constant 0 : index
    %10 = vector.load %arg1[%c0_7, %c0_8] : memref<2x128xf32, #tpu.memory_space<vmem>>, vector<2x128xf32>
    %cst = arith.constant dense<0.000000e+00> : vector<10x128xf32>
    %11 = tpu.matmul %0, %10, %cst {dimension_numbers = #tpu.dot_dimension_numbers<[1], [0], [0], [1], [0, 0, 1, 1], [], []>} : vector<10x2xf32>, vector<2x128xf32>, vector<10x128xf32> -> vector<10x128xf32>
    %12 = arith.addf %11, %9 : vector<10x128xf32>
    %13 = vector.broadcast %2 : vector<10x1xf32> to vector<10x128xf32>
    %14 = arith.addf %12, %13 : vector<10x128xf32>
    %15 = math.tanh %14 : vector<10x128xf32>
    %16 = vector.broadcast %3 : vector<10x1xf32> to vector<10x128xf32>
    %17 = arith.mulf %16, %15 : vector<10x128xf32>
    %cst_9 = arith.constant dense<0.000000e+00> : vector<128xf32>
    %18 = vector.multi_reduction <add>, %17, %cst_9 [0] : vector<10x128xf32> to vector<128xf32>
    %19 = vector.shape_cast %18 : vector<128xf32> to vector<1x128xf32>
    %20 = vector.broadcast %4 : vector<1x1xf32> to vector<1x128xf32>
    %21 = arith.addf %19, %20 : vector<1x128xf32>
    %c0_10 = arith.constant 0 : index
    %c0_11 = arith.constant 0 : index
    %22 = vector.load %arg4[%c0_10, %c0_11] : memref<1x128xf32, #tpu.memory_space<vmem>>, vector<1x128xf32>
    tpu.vector_store %arg4[%c0_10, %c0_11], %21 {strides = array<i32>} : memref<1x128xf32, #tpu.memory_space<vmem>>, vector<1x128xf32>,
    return
  }
  func.func @transform_0(%arg0: i32) -> (i32, i32) {
    %c0_i32 = arith.constant 0 : i32
    %c0_i32_0 = arith.constant 0 : i32
    return %c0_i32, %arg0 : i32, i32
  }
  func.func @transform_1(%arg0: i32) -> (i32, i32) {
    %c0_i32 = arith.constant 0 : i32
    %c0_i32_0 = arith.constant 0 : i32
    return %c0_i32, %arg0 : i32, i32
  }
  func.func @transform_2(%arg0: i32) -> (i32, i32) {
    %c0_i32 = arith.constant 0 : i32
    %c0_i32_0 = arith.constant 0 : i32
    %c0_i32_1 = arith.constant 0 : i32
    return %c0_i32, %c0_i32_0 : i32, i32
  }
  func.func @transform_3(%arg0: i32) -> (i32, i32) {
    %c0_i32 = arith.constant 0 : i32
    %c0_i32_0 = arith.constant 0 : i32
    return %c0_i32, %arg0 : i32, i32
  }
}

</mosaic_0001>

<bundles_post_ra>
// kernel: g_gaussian_forward.1
= control target key start
LH: loop header
LB: loop body
LE: loop exit
PB: predicated region body
PF: predicated region fallthrough
CT: control target
= control target key end

     0   :  { %8 = vsyncpa [#allocation3], 0  ;;  %s668_s0 = inlined_call_operand.vmem [shape: f32[2,256], index: 0, kind: input, shape index: {}]   ;;  %s669_s1 = inlined_call_operand.vmem [shape: s32[1,256], index: 1, kind: input, shape index: {}]   ;;  %s670_s2 = inlined_call_operand.vmem [shape: f32[10,6], index: 2, kind: input, shape index: {}]   ;;  %s671_s3 = inlined_call_operand.hbm [shape: f32[1,256], index: 3, kind: output, shape index: {}]  }
   0x1   :  { %10 = vsyncpa [#allocation3 + $0x1], 0  ;;  %s560_s12 = smov 0   ;;  %s562_s13 = smov 0  }
   0x2   :  { %s564_s14 = smov 0   ;;  %s566_s15 = smov 0  }
   0x3 LB: > { %s581_s16 = sadd.s32 4294967295, %s533_s15   ;;  %s401_s17 = sadd.s32 4294967294, %s533_s15   ;;  %s533_s15 = sphi %s566_s15, %s677_s15   ;;  %s529_s14 = sphi %s564_s14, %s676_s14   ;;  %s525_s13 = sphi %s562_s13, %s675_s13   ;;  %s521_s12 = sphi %s560_s12, %s674_s12  }
   0x4   : > { %s585_s18 = sadd.s32 1, %s533_s15   ;;  %s96_s19 = sadd.s32 1, %s529_s14 }
   0x5   : > { %s93_s20 = ssub.s32 %s533_s15, %s585_s18  ;;  %p106_p0 = scmp.ne.s32.totalorder %s529_s14, %s525_s13 }
   0x6   : > { %p94_p1 = scmp.eq.s32.totalorder %s93_s20, 0  ;;  %p107_p2 = scmp.eq.s32.totalorder %s581_s16, 1 }
   0x7   : > { %p112_p3 = scmp.ne.s32.totalorder %s525_s13, %s521_s12  ;;  %p113_p4 = scmp.eq.s32.totalorder %s401_s17, 1 }
   0x8   : > { %s596_s21 = scalar_select %p94_p1, %s529_s14, %s96_s19  }
   0x9   : > { %p598_p5 = por %p107_p2, %p106_p0  ;;  %p602_p6 = por %p113_p4, %p112_p3 }
   0xa   : > { %p404_p7 = scmp.ge.s32.totalorder %s533_s15, 1  ;;  %p147_p8 = scmp.lt.s32.totalorder %s533_s15, 3 }
   0xc   : > { %p148_p9 = pnand %p404_p7, %p147_p8 }
   0xd   : > { %p172_p10 = scmp.lt.s32.totalorder (!%p148_p9), %s581_s16, 1  ;;  %s170_s11 = sand.u32 (!%p148_p9), 1, %s525_s13  }
   0xe   : > { %151 = sbr.rel (%p148_p9) target bundleno = 270 (0x10e), region = 32  ;;  %s409_s17 = sshll.u32 (!%p148_p9), %s581_s16, 4 }
   0xf   : > { %s171_s19 = scalar_lea.vmem (!%p148_p9), [#allocation2], %s170_s11  ;;  %s325_s27 = scalar_lea.sflag (!%p148_p9), [#allocation3], %s170_s11 }
  0x10   : > { %s337_s20 = sshll.u32 (!%p148_p9), %s171_s19, 4  ;;  %s338_s20 = int_to_ptr.vmem [resolvable:$true] %s337_s20 }
  0x11   : > { %s473_s28 = scalar_lea.vmem (!%p148_p9), %s338_s20, 16 }
  0x12   : > { %p474_p11 = scmp.ne.s32.totalorder (!%p148_p9), %s338_s20, %s473_s28 }
  0x13   : > { %v179_v0 = vld [vmem:[%s670_s2] sm:$0xff]  ;;  %vm203_vm0 = vcmask 15360   ;;  %s614_s26 = scalar_select %p172_p10, %s581_s16, 1  ;;  %v180_v1 = vld [vmem:[%s670_s2 + $0x8] sm:$0x3]  ;;  %v535_v2 = vmov 2   ;;  %v195_v8 = vlaneseq }
  0x14   : > { %417 = vmatprep.mubr.msk.f32.mxu0 %vm203_vm0, %v179_v0  ;;  %463 = vset.pattern.permute.xlu0 %v535_v2  ;;  %v536_v3 = vmov 3   ;;  %vm208_vm1 = vcmask 1041408   ;;  %v537_v5 = vmov 4   ;;  %v181_v6 = vld [vmem:[%s670_s2] sm:$0x1]  ;;  %v538_v7 = vmov 5   ;;  %p475_p12 = pnand %p474_p11, %p598_p5 }
  0x15   : > { %464 = vset.pattern.permute.xlu1 %v536_v3  ;;  %191 = vperm.xlu0 %463, %v180_v1   ;;  %s405_s29 = sshll.u32 %s614_s26, 1  ;;  %s178_s10 = scalar_lea.vmem %s669_s1, %s614_s26  ;;  %v196_v9 = vshrl.u32 %v195_v8, 7 }
  0x16   : > { %292 = vperm.xlu1 %464, %v180_v1   ;;  %s175_s5 = scalar_lea.vmem %s668_s0, %s405_s29  ;;  %v182_v10 = vld [vmem:[%s178_s10] sm:$0x1]  ;;  %s335_s26 = scalar_lea.hbm %s671_s3, %s409_s17 }
  0x17   : > { %v202_v4 = vld [vmem:[%s175_s5] sm:$0x3]  ;;  %v197_v11 = vsub.s32 0, %v196_v9  ;;  %v183_v12 = vcvt.s32.f32 %v182_v10  ;;  %p476_p13 = pneg %p475_p12  ;;  %s539_s29 = smov [#allocation2]  }
  0x18   : > { %415 = vmatprep.subr.msk.mxu0 %vm208_vm1, %v202_v4  ;;  %s477_s30 = sshll.u32 %s539_s29, 4  ;;  %s478_s30 = int_to_ptr.vmem [resolvable:$false] %s477_s30 }
  0x19   : > { %186 = vperm.xlu0 %463, %v179_v0   ;;  %416 = vmatpush3.msk.msra.mxu0 %vm208_vm1, %v202_v4  ;;  %v198_v14 = vrot.slane %v183_v12, %v197_v11  ;;  %s479_s16 = scalar_lea.vmem %s478_s30, 32  ;;  %p480_p0 = scmp.lt.s32.totalorder %s338_s20, %s478_s30 }
  0x1a   : > { %288 = vperm.xlu1 %464, %v179_v0   ;;  %418 = vmatmul.mubr.msk.f32.vlgmr.msra.gmra.mxu0 %vm203_vm0, %v180_v1  ;;  %p481_p1 = scmp.lt.s32.totalorder %s479_s16, %s473_s28 }
  0x1c   : > { %p482_p2 = por %p481_p1, %p480_p0 }
  0x1d   : > { %465 = vset.pattern.permute.xlu0 %v537_v5 }
  0x1e   : > { %304 = vperm.xlu0 %465, %v180_v1   ;;  %466 = vset.pattern.permute.xlu1 %v537_v5  ;;  %p483_p3 = pnand %p482_p2, %p476_p13 }
  0x1f   : > { %300 = vperm.xlu1 %466, %v179_v0  }
  0x22   : > { %468 = vset.pattern.permute.xlu0 %v538_v7 }
  0x23   : > { %467 = vset.pattern.permute.xlu1 %v538_v7 }
  0x24   : > { %319 = vperm.xlu1 %467, %v181_v6  }
  0x90   : > { %v192_v13 = vpop.permute.xlu0 %191 }
  0x91   : > { %v293_v15 = vpop.permute.xlu1 %292  ;;  %v201_v17 = vmul.f32 %v198_v14, %v192_v13 }
  0x94   : > { %v187_v16 = vpop.permute.xlu0 %186 }
  0x95   : > { %v200_v19 = vmul.f32 %v198_v14, %v187_v16  ;;  %v289_v24 = vpop.permute.xlu1 %288 }
  0x99   : > { %v305_v26 = vpop.permute.xlu0 %304 }
  0x9a   : > { %v301_v28 = vpop.permute.xlu1 %300 }
  0x9f   : > { %v320_v39 = vpop.permute.xlu1 %319 }
  0xda   : > { %v419_v18 = vpop.f32.mrf.mxu0 }
  0xdb   : > { %v284_v20 = vadd.f32 %v419_v18, %v201_v17 }
  0xdc   : > { %v278_v21 = vpop.f32.mrf.mxu0 }
  0xdd   : > { %v296_v22 = vadd.f32 %v293_v15, %v284_v20  ;;  %v279_v23 = vadd.f32 %v278_v21, %v200_v19 }
  0xdf   : > { %469 = vtanh.f32 %v296_v22  ;;  %v295_v25 = vadd.f32 %v289_v24, %v279_v23 }
  0xe1   : > { %471 = vtanh.f32 %v295_v25 }
  0xec   : > { %v470_v27 = vpop.eup %469 }
  0xed   : > { %v308_v29 = vmul.f32 %v470_v27, %v305_v26 }
  0xee   : > { %v472_v30 = vpop.eup %471 }
  0xef   : > { %v309_v31 = vsel %vm208_vm1, %v308_v29, 0.0  ;;  %v307_v32 = vmul.f32 %v472_v30, %v301_v28 }
  0xf1   : > { %v310_v33 = vadd.f32 %v309_v31, %v307_v32 }
  0xf3   : > { %v311_v34 = vrot.slane %v310_v33, 4 }
  0xf5   : > { %v312_v35 = vadd.f32 %v311_v34, %v310_v33 }
  0xf7   : > { %v313_v36 = vrot.slane %v312_v35, 2 }
  0xf9   : > { %v314_v37 = vadd.f32 %v313_v36, %v312_v35 }
  0xfb   : > { %v315_v38 = vrot.slane %v314_v37, 1 }
  0xfd   : > { %v316_v40 = vadd.f32 %v315_v38, %v314_v37 }
  0xff   : > { %v322_v41 = vadd.f32 %v320_v39, %v316_v40 }
 0x101   : > { %323 = vst [vmem:[%s171_s19] sm:$0x1] %v322_v41 }
 0x102   : > { %486 = shalt.err (!%p483_p3)
}
 0x103   : > { %s487_s4 = scalar_lea.hbm %s335_s26, 16  ;;  %s491_s7 = scalar_lea.hbm %s671_s3, 32 }
 0x104   : > { %p488_p4 = scmp.ne.s32.totalorder %s335_s26, %s487_s4  ;;  %p492_p9 = scmp.lt.s32.totalorder %s335_s26, %s671_s3 }
 0x105   : > { %p493_p10 = scmp.lt.s32.totalorder %s491_s7, %s487_s4 }
 0x106   : > { %p489_p7 = pnand %p488_p4, %p598_p5 }
 0x107   : > { %p494_p11 = por %p493_p10, %p492_p9 }
 0x108   : > { %p490_p8 = pneg %p489_p7 }
 0x10a   : > { %p495_p12 = pnand %p494_p11, %p490_p8 }
 0x10c   : > { %498 = shalt.err (!%p495_p12)
}
 0x10d   : > { %420 = dma.vmem_to_hbm [thread:$0]  (%p598_p5), %s338_s20, 16, %s335_s26, %s325_s27  }
 0x10e PF: > { %p426_p13 = scmp.ge.s32.totalorder %s533_s15, 2  ;;  %s349_s10 = sand.u32 1, %s521_s12  }
 0x10f   : > { %s350_s11 = scalar_lea.sflag [#allocation3], %s349_s10 }
 0x110   : > { %p423_p0 = pnand %p426_p13, %p602_p6 }
 0x112   : > { %p424_p1 = pneg %p423_p0 }
 0x114   : > { %516 = dma.done.wait (%p424_p1), %s350_s11, 16  }
 0x115   : > { %518 = vsyncadd (%p424_p1), %s350_s11, 4294967280  ;;  %p13_p2 = scmp.ge.s32.totalorder %s585_s18, 4   ;;  %s674_s12 = smov %s525_s13 }
 0x116   : > { %s675_s13 = smov %s529_s14  ;;  %s676_s14 = smov %s596_s21 }
 0x117   : > { %s677_s15 = smov %s585_s18  ;;  %15 = sbr.rel (!%p13_p2) target bundleno = 3 (0x3), region = 70 }
 0x11c   :  { %354 = vsyncpa [#allocation3], 1 }
 0x11d   :  { %356 = vsyncpa [#allocation3 + $0x1], 1 }

</bundles_post_ra>
